<compile_context>
chip_gen: v6e
topology: v6e:2x2x1
jax: 0.10.0
libtpu: 0.0.40
codegen_flags: <defaults>
</compile_context>

<pallas_src>
import functools

import jax
import jax.numpy as jnp
from jax.experimental import pallas as pl
from jax.experimental.pallas import tpu as pltpu

EPS = 1e-5


# ----------------------------------------------------------------------------- kernels
def stats_kernel(x_ref, st_ref):
    """Per-image, per-channel partial (sum, sum-of-squares) over token tiles.
    Grid = (batch 'parallel', token-tile 'arbitrary'); the (C, 2) output block
    stays resident across the token axis and is reduced over batch in JAX."""
    @pl.when(pl.program_id(1) == 0)
    def _():
        st_ref[...] = jnp.zeros_like(st_ref)

    x = x_ref[...]                                        # (C, Tn)
    st_ref[:, 0:1] += jnp.sum(x, axis=1, keepdims=True)
    st_ref[:, 1:2] += jnp.sum(x * x, axis=1, keepdims=True)


def mixer_kernel(x_ref, pw_ref, cp_ref, o_ref, st_ref, *, col_shifts, row_shifts):
    """Per-image token mixer + fused norm2 partial statistics.
         x1 = x + ls1 * (AvgPool_count_exclude_pad(BN1(x)) - BN1(x))
    BN1 is pre-folded into per-channel (scale, shift).  The pooling is
    SEPARABLE: column rolls masked by column-validity, then row rolls of that
    partial sum masked by row-validity, then one multiply by 1/valid_count —
    exact count_include_pad=False semantics (wrapped lanes carry weight 0)."""
    x = x_ref[...]                                        # (C, HW), one image
    scale1 = cp_ref[:, 0:1]                               # (C, 1)
    shift1 = cp_ref[:, 1:2]
    ls1 = cp_ref[:, 2:3]

    xn1 = x * scale1 + shift1                             # folded BatchNorm1

    ncol = len(col_shifts)
    hpart = xn1
    for k, s in enumerate(col_shifts):                    # horizontal pass (dw != 0)
        hpart = hpart + pltpu.roll(xn1, s, 1) * pw_ref[k:k + 1, :]
    vsum = hpart
    for k, s in enumerate(row_shifts):                    # vertical pass (dh != 0)
        vsum = vsum + pltpu.roll(hpart, s, 1) * pw_ref[ncol + k:ncol + k + 1, :]
    inv_cnt = pw_ref[ncol + len(row_shifts):ncol + len(row_shifts) + 1, :]
    pooled = vsum * inv_cnt

    x1 = x + ls1 * (pooled - xn1)
    o_ref[...] = x1

    # Fused norm2 partial stats: saves a second full HBM read of x1.
    st_ref[:, 0:1] = jnp.sum(x1, axis=1, keepdims=True)
    st_ref[:, 1:2] = jnp.sum(x1 * x1, axis=1, keepdims=True)


def mlp_kernel(x1_ref, cp_ref, bv1_ref, w1t_ref, w2t_ref, o_ref):
    """Per (image, token-tile): out = x1 + ls2*(W2 @ relu(W1 @ BN2(x1) + b1) + b2).
    Matmuls are (hidden,C)@(C,Tn) and (C,hidden)@(hidden,Tn) so MXU output
    columns and the residual store are lane-dense along the token axis.
    Operands are cast to the (possibly bf16) weight dtype only at the dot."""
    x1 = x1_ref[...]                                      # (C, Tn) f32
    scale2 = cp_ref[:, 0:1]
    shift2 = cp_ref[:, 1:2]
    bv2 = cp_ref[:, 2:3]
    ls2 = cp_ref[:, 3:4]

    mdt = w1t_ref.dtype
    xn2 = x1 * scale2 + shift2                            # folded BatchNorm2
    h = jnp.dot(w1t_ref[...], xn2.astype(mdt),
                preferred_element_type=jnp.float32) + bv1_ref[...]
    h = jnp.maximum(h, 0.0)                               # ReLU
    y = jnp.dot(w2t_ref[...], h.astype(mdt),
                preferred_element_type=jnp.float32) + bv2
    o_ref[...] = x1 + ls2 * y


# ----------------------------------------------------------------------------- glue
def _token_tile(hw):
    """Largest multiple-of-128 tile <= 2048 dividing hw; else the full image."""
    for t in (2048, 1024, 512, 256, 128):
        if hw % t == 0:
            return t
    # TODO(synk): ragged HW falls back to one per-image (C, HW) block (same
    # size the mixer already holds); pad/mask tiling only needed for huge HW.
    return hw


def build_pool_params(H, W, pool_size=3):
    """Separable AvgPool2d(pool_size, stride=1, pad=pool_size//2,
    count_include_pad=False) parameters on flattened (h, w) tokens.
      pw : (4r+1, H*W) f32 = [col masks (2r), row masks (2r), 1/valid_count]
      col_shifts/row_shifts : static lane-roll amounts matching the mask rows,
      chosen so rolled[n] = x[(n + d) % HW] / x[(n + d*W) % HW]."""
    r = pool_size // 2
    hw = H * W
    ww = jnp.arange(W)
    hh = jnp.arange(H)
    col_masks, col_shifts, row_masks, row_shifts = [], [], [], []
    for d in range(-r, r + 1):
        if d == 0:
            continue
        cm = ((ww + d >= 0) & (ww + d < W)).astype(jnp.float32)   # (W,)
        rm = ((hh + d >= 0) & (hh + d < H)).astype(jnp.float32)   # (H,)
        col_masks.append(jnp.tile(cm, H))          # per-token: depends on w = n % W
        row_masks.append(jnp.repeat(rm, W))        # per-token: depends on h = n // W
        col_shifts.append((-d) % hw)
        row_shifts.append((-d * W) % hw)
    col_cnt = 1.0 + sum(col_masks)
    row_cnt = 1.0 + sum(row_masks)
    inv_cnt = 1.0 / (col_cnt * row_cnt)
    pw = jnp.stack(col_masks + row_masks + [inv_cnt])   # (4r+1, H*W)
    return pw, tuple(col_shifts), tuple(row_shifts)


@functools.partial(jax.jit, static_argnames=("pool_size", "matmul_dtype"))
def bottleneck_block(x_nchw, params, pool_size=3, matmul_dtype=jnp.float32):
    """x_nchw: (B, C, H, W) float32, matching the PyTorch module's input."""
    B, C, H, W = x_nchw.shape
    HW = H * W
    N = B * HW
    hidden = params["w1"].shape[1]

    # Free view of NCHW: per-image (C, HW) slabs are already lane-dense.
    x3d = x_nchw.reshape(B, C, HW)

    tn = _token_tile(HW)
    nt = HW // tn

    # ---- norm1 batch stats: per-image (C, 2) partials, reduced in plain JAX ----
    # TODO(synk): running_mean/running_var momentum updates of BatchNorm2d are
    # not produced (normalization uses batch statistics, as in training mode).
    st1 = pl.pallas_call(
        stats_kernel,
        out_shape=jax.ShapeDtypeStruct((B, C, 2), jnp.float32),
        grid=(B, nt),
        in_specs=[pl.BlockSpec((None, C, tn), lambda b, i: (b, 0, i))],
        out_specs=pl.BlockSpec((None, C, 2), lambda b, i: (b, 0, 0)),
        compiler_params=pltpu.CompilerParams(
            dimension_semantics=("parallel", "arbitrary")),
    )(x3d)
    mean1 = jnp.sum(st1[:, :, 0], axis=0) / N
    # TODO(synk): E[x^2]-E[x]^2 in one f32 pass can cancel for large-mean
    # channels; clamped at 0 here, a Welford/shifted accumulation would be safer.
    var1 = jnp.maximum(jnp.sum(st1[:, :, 1], axis=0) / N - mean1 * mean1, 0.0)
    scale1 = params["g1"] * jax.lax.rsqrt(var1 + EPS)
    shift1 = params["b1"] - mean1 * scale1
    cp1 = jnp.stack([scale1, shift1, params["ls1"], jnp.zeros_like(scale1)], axis=1)

    pw, col_shifts, row_shifts = build_pool_params(H, W, pool_size)
    nw = pw.shape[0]

    # ---- token mixer + fused norm2 partial stats: one image per grid step ----
    # TODO(synk): for B == 1 on v7x a second (token-tile) grid axis with a
    # 1-row halo would be needed to keep both TensorCores busy.
    x1_3d, st2 = pl.pallas_call(
        functools.partial(mixer_kernel, col_shifts=col_shifts, row_shifts=row_shifts),
        out_shape=(jax.ShapeDtypeStruct((B, C, HW), jnp.float32),
                   jax.ShapeDtypeStruct((B, C, 2), jnp.float32)),
        grid=(B,),
        in_specs=[pl.BlockSpec((None, C, HW), lambda b: (b, 0, 0)),
                  pl.BlockSpec((nw, HW), lambda b: (0, 0)),
                  pl.BlockSpec((C, 4), lambda b: (0, 0))],
        out_specs=(pl.BlockSpec((None, C, HW), lambda b: (b, 0, 0)),
                   pl.BlockSpec((None, C, 2), lambda b: (b, 0, 0))),
        compiler_params=pltpu.CompilerParams(dimension_semantics=("parallel",)),
    )(x3d, pw, cp1)

    # ---- norm2 from the fused partials (no extra HBM read of x1) ----
    mean2 = jnp.sum(st2[:, :, 0], axis=0) / N
    var2 = jnp.maximum(jnp.sum(st2[:, :, 1], axis=0) / N - mean2 * mean2, 0.0)
    scale2 = params["g2"] * jax.lax.rsqrt(var2 + EPS)
    shift2 = params["b2"] - mean2 * scale2
    cp2 = jnp.stack([scale2, shift2, params["bv2"], params["ls2"]], axis=1)

    w1t = jnp.transpose(params["w1"]).astype(matmul_dtype)   # (hidden, C)
    w2t = jnp.transpose(params["w2"]).astype(matmul_dtype)   # (C, hidden)

    # ---- channel MLP + residual: tiled over (image, token tile), all parallel ----
    out3d = pl.pallas_call(
        mlp_kernel,
        out_shape=jax.ShapeDtypeStruct((B, C, HW), jnp.float32),
        grid=(B, nt),
        in_specs=[pl.BlockSpec((None, C, tn), lambda b, i: (b, 0, i)),
                  pl.BlockSpec((C, 4), lambda b, i: (0, 0)),
                  pl.BlockSpec((hidden, 1), lambda b, i: (0, 0)),
                  pl.BlockSpec((hidden, C), lambda b, i: (0, 0)),
                  pl.BlockSpec((C, hidden), lambda b, i: (0, 0))],
        out_specs=pl.BlockSpec((None, C, tn), lambda b, i: (b, 0, i)),
        compiler_params=pltpu.CompilerParams(
            dimension_semantics=("parallel", "parallel")),
    )(x1_3d, cp2, params["bv1"].reshape(hidden, 1), w1t, w2t)

    return out3d.reshape(B, C, H, W)


# ----------------------------------------------------------------------------- reference (plain JAX, NCHW)
def ref_forward(x, p):
    def bn(t, g, b):
        m = t.mean(axis=(0, 2, 3), keepdims=True)
        v = ((t - m) ** 2).mean(axis=(0, 2, 3), keepdims=True)
        return (t - m) / jnp.sqrt(v + EPS) * g[None, :, None, None] + b[None, :, None, None]

    def avgpool3(t):
        B, C, H, W = t.shape
        tp = jnp.pad(t, ((0, 0), (0, 0), (1, 1), (1, 1)))
        op = jnp.pad(jnp.ones((1, 1, H, W), jnp.float32), ((0, 0), (0, 0), (1, 1), (1, 1)))
        s = jnp.zeros_like(t)
        cnt = jnp.zeros((1, 1, H, W), jnp.float32)
        for dy in range(3):
            for dx in range(3):
                s = s + tp[:, :, dy:dy + H, dx:dx + W]
                cnt = cnt + op[:, :, dy:dy + H, dx:dx + W]
        return s / cnt

    xn1 = bn(x, p["g1"], p["b1"])
    x1 = x + p["ls1"][None, :, None, None] * (avgpool3(xn1) - xn1)
    xn2 = bn(x1, p["g2"], p["b2"])
    h = jnp.einsum("bchw,cd->bdhw", xn2, p["w1"]) + p["bv1"][None, :, None, None]
    h = jnp.maximum(h, 0.0)
    y = jnp.einsum("bdhw,dc->bchw", h, p["w2"]) + p["bv2"][None, :, None, None]
    return x1 + p["ls2"][None, :, None, None] * y


# ----------------------------------------------------------------------------- main
if __name__ == "__main__":
    B, C, H, W = 2, 8, 16, 16
    mlp_ratio = 4.0
    hidden = int(C * mlp_ratio)
    layer_scale_init = 1e-5

    key = jax.random.PRNGKey(0)
    keys = jax.random.split(key, 8)

    x = jax.random.normal(keys[0], (B, C, H, W), jnp.float32)

    params = {
        # BatchNorm affine params (perturbed to make the check non-trivial).
        "g1": 1.0 + 0.1 * jax.random.normal(keys[1], (C,), jnp.float32),
        "b1": 0.1 * jax.random.normal(keys[2], (C,), jnp.float32),
        "g2": 1.0 + 0.1 * jax.random.normal(keys[3], (C,), jnp.float32),
        "b2": 0.1 * jax.random.normal(keys[4], (C,), jnp.float32),
        # 1x1 conv weights stored as (in, out) matrices.
        "w1": 0.1 * jax.random.normal(keys[5], (C, hidden), jnp.float32),
        "bv1": 0.1 * jax.random.normal(keys[6], (hidden,), jnp.float32),
        "w2": 0.1 * jax.random.normal(keys[7], (hidden, C), jnp.float32),
        "bv2": jnp.zeros((C,), jnp.float32),
        # layer scales (module default init).
        "ls1": layer_scale_init * jnp.ones((C,), jnp.float32),
        "ls2": layer_scale_init * jnp.ones((C,), jnp.float32),
    }
    # TODO(synk): drop_rate=0 / drop_path=0 -> Dropout/DropPath are identities and are omitted.

    out = bottleneck_block(x, params)          # f32 matmuls for the tight check;
    out = jax.block_until_ready(out)           # pass matmul_dtype=jnp.bfloat16 in prod.

    ref = ref_forward(x, params)
    assert out.shape == (B, C, H, W)
    assert jnp.allclose(out, ref, atol=1e-5, rtol=1e-5), "mismatch vs reference"

    print("KERNEL_OK")
</pallas_src>

<mosaic_0001>
module attributes {stable_mosaic.version = 11 : i64} {
  func.func @stats_kernel(%arg0: i32, %arg1: i32, %arg2: memref<1x8x256xf32, #tpu.memory_space<vmem>>, %arg3: memref<1x8x2xf32, #tpu.memory_space<vmem>>) attributes {dimension_semantics = [#tpu.dimension_semantics<parallel>, #tpu.dimension_semantics<arbitrary>], iteration_bounds = array<i64: 2, 1>, scalar_prefetch = 0 : i64, scratch_operands = 0 : i64, tpu.core_type = #tpu.core_type<tc>, window_params = [{transform_indices = @transform_0, window_bounds = array<i64: 1, 8, 256>}, {transform_indices = @transform_1, window_bounds = array<i64: 1, 8, 2>}]} {
    %c0_i32 = arith.constant 0 : i32
    %0 = arith.cmpi eq, %arg1, %c0_i32 : i32
    %1 = arith.extui %0 : i1 to i32
    %c0_i32_0 = arith.constant 0 : i32
    %2 = arith.cmpi ne, %1, %c0_i32_0 : i32
    scf.if %2 {
      %cst_15 = arith.constant 0.000000e+00 : f32
      %22 = vector.broadcast %cst_15 : f32 to vector<8x2xf32>
      %c0_16 = arith.constant 0 : index
      %c0_17 = arith.constant 0 : index
      %c0_18 = arith.constant 0 : index
      %23 = vector.load %arg3[%c0_16, %c0_17, %c0_18] : memref<1x8x2xf32, #tpu.memory_space<vmem>>, vector<1x8x2xf32>
      %24 = vector.shape_cast %23 : vector<1x8x2xf32> to vector<8x2xf32>
      %25 = vector.shape_cast %22 : vector<8x2xf32> to vector<1x8x2xf32>
      tpu.vector_store %arg3[%c0_16, %c0_17, %c0_18], %25 {strides = array<i32>} : memref<1x8x2xf32, #tpu.memory_space<vmem>>, vector<1x8x2xf32>,
    } else {
    }
    %c0 = arith.constant 0 : index
    %c0_1 = arith.constant 0 : index
    %c0_2 = arith.constant 0 : index
    %3 = vector.load %arg2[%c0, %c0_1, %c0_2] : memref<1x8x256xf32, #tpu.memory_space<vmem>>, vector<1x8x256xf32>
    %4 = vector.shape_cast %3 : vector<1x8x256xf32> to vector<8x256xf32>
    %c0_3 = arith.constant 0 : index
    %c0_4 = arith.constant 0 : index
    %c0_5 = arith.constant 0 : index
    %5 = vector.load %arg3[%c0_3, %c0_4, %c0_5] : memref<1x8x2xf32, #tpu.memory_space<vmem>>, vector<1x8x1xf32>
    %6 = vector.shape_cast %5 : vector<1x8x1xf32> to vector<8x1xf32>
    %cst = arith.constant dense<0.000000e+00> : vector<8xf32>
    %7 = vector.multi_reduction <add>, %4, %cst [1] : vector<8x256xf32> to vector<8xf32>
    %8 = vector.shape_cast %7 : vector<8xf32> to vector<8x1xf32>
    %9 = arith.addf %6, %8 : vector<8x1xf32>
    %c0_6 = arith.constant 0 : index
    %c0_7 = arith.constant 0 : index
    %c0_8 = arith.constant 0 : index
    %10 = vector.load %arg3[%c0_6, %c0_7, %c0_8] : memref<1x8x2xf32, #tpu.memory_space<vmem>>, vector<1x8x1xf32>
    %11 = vector.shape_cast %10 : vector<1x8x1xf32> to vector<8x1xf32>
    %12 = vector.shape_cast %9 : vector<8x1xf32> to vector<1x8x1xf32>
    tpu.vector_store %arg3[%c0_6, %c0_7, %c0_8], %12 {strides = array<i32>} : memref<1x8x2xf32, #tpu.memory_space<vmem>>, vector<1x8x1xf32>,
    %c0_9 = arith.constant 0 : index
    %c0_10 = arith.constant 0 : index
    %c1 = arith.constant 1 : index
    %13 = vector.load %arg3[%c0_9, %c0_10, %c1] : memref<1x8x2xf32, #tpu.memory_space<vmem>>, vector<1x8x1xf32>
    %14 = vector.shape_cast %13 : vector<1x8x1xf32> to vector<8x1xf32>
    %15 = arith.mulf %4, %4 : vector<8x256xf32>
    %cst_11 = arith.constant dense<0.000000e+00> : vector<8xf32>
    %16 = vector.multi_reduction <add>, %15, %cst_11 [1] : vector<8x256xf32> to vector<8xf32>
    %17 = vector.shape_cast %16 : vector<8xf32> to vector<8x1xf32>
    %18 = arith.addf %14, %17 : vector<8x1xf32>
    %c0_12 = arith.constant 0 : index
    %c0_13 = arith.constant 0 : index
    %c1_14 = arith.constant 1 : index
    %19 = vector.load %arg3[%c0_12, %c0_13, %c1_14] : memref<1x8x2xf32, #tpu.memory_space<vmem>>, vector<1x8x1xf32>
    %20 = vector.shape_cast %19 : vector<1x8x1xf32> to vector<8x1xf32>
    %21 = vector.shape_cast %18 : vector<8x1xf32> to vector<1x8x1xf32>
    tpu.vector_store %arg3[%c0_12, %c0_13, %c1_14], %21 {strides = array<i32>} : memref<1x8x2xf32, #tpu.memory_space<vmem>>, vector<1x8x1xf32>,
    return
  }
  func.func @transform_0(%arg0: i32, %arg1: i32) -> (i32, i32, i32) {
    %c0_i32 = arith.constant 0 : i32
    %c0_i32_0 = arith.constant 0 : i32
    return %arg0, %c0_i32, %arg1 : i32, i32, i32
  }
  func.func @transform_1(%arg0: i32, %arg1: i32) -> (i32, i32, i32) {
    %c0_i32 = arith.constant 0 : i32
    %c0_i32_0 = arith.constant 0 : i32
    %c0_i32_1 = arith.constant 0 : i32
    return %arg0, %c0_i32, %c0_i32_0 : i32, i32, i32
  }
}

module attributes {stable_mosaic.version = 11 : i64} {
  func.func @mixer_kernel(%arg0: i32, %arg1: memref<1x8x256xf32, #tpu.memory_space<vmem>>, %arg2: memref<5x256xf32, #tpu.memory_space<vmem>>, %arg3: memref<8x4xf32, #tpu.memory_space<vmem>>, %arg4: memref<1x8x256xf32, #tpu.memory_space<vmem>>, %arg5: memref<1x8x2xf32, #tpu.memory_space<vmem>>) attributes {dimension_semantics = [#tpu.dimension_semantics<parallel>], iteration_bounds = array<i64: 2>, scalar_prefetch = 0 : i64, scratch_operands = 0 : i64, tpu.core_type = #tpu.core_type<tc>, window_params = [{transform_indices = @transform_0, window_bounds = array<i64: 1, 8, 256>}, {pipeline_mode = #tpu.pipeline_mode<synchronous>, transform_indices = @transform_1, window_bounds = array<i64: 5, 256>}, {pipeline_mode = #tpu.pipeline_mode<synchronous>, transform_indices = @transform_2, window_bounds = array<i64: 8, 4>}, {transform_indices = @transform_3, window_bounds = array<i64: 1, 8, 256>}, {transform_indices = @transform_4, window_bounds = array<i64: 1, 8, 2>}]} {
    %c0 = arith.constant 0 : index
    %c0_0 = arith.constant 0 : index
    %c0_1 = arith.constant 0 : index
    %0 = vector.load %arg1[%c0, %c0_0, %c0_1] : memref<1x8x256xf32, #tpu.memory_space<vmem>>, vector<1x8x256xf32>
    %1 = vector.shape_cast %0 : vector<1x8x256xf32> to vector<8x256xf32>
    %c0_2 = arith.constant 0 : index
    %c0_3 = arith.constant 0 : index
    %2 = vector.load %arg3[%c0_2, %c0_3] : memref<8x4xf32, #tpu.memory_space<vmem>>, vector<8x1xf32>
    %c0_4 = arith.constant 0 : index
    %c1 = arith.constant 1 : index
    %3 = vector.load %arg3[%c0_4, %c1] : memref<8x4xf32, #tpu.memory_space<vmem>>, vector<8x1xf32>
    %c0_5 = arith.constant 0 : index
    %c2 = arith.constant 2 : index
    %4 = vector.load %arg3[%c0_5, %c2] : memref<8x4xf32, #tpu.memory_space<vmem>>, vector<8x1xf32>
    %5 = vector.broadcast %2 : vector<8x1xf32> to vector<8x256xf32>
    %6 = arith.mulf %1, %5 : vector<8x256xf32>
    %7 = vector.broadcast %3 : vector<8x1xf32> to vector<8x256xf32>
    %8 = arith.addf %6, %7 : vector<8x256xf32>
    %c1_i32 = arith.constant 1 : i32
    %9 = tpu.dynamic_rotate %8 by %c1_i32 dim 1 : vector<8x256xf32>, i32 -> vector<8x256xf32>
    %c0_6 = arith.constant 0 : index
    %c0_7 = arith.constant 0 : index
    %10 = vector.load %arg2[%c0_6, %c0_7] : memref<5x256xf32, #tpu.memory_space<vmem>>, vector<1x256xf32>
    %11 = vector.broadcast %10 : vector<1x256xf32> to vector<8x256xf32>
    %12 = arith.mulf %9, %11 : vector<8x256xf32>
    %13 = arith.addf %8, %12 : vector<8x256xf32>
    %c255_i32 = arith.constant 255 : i32
    %14 = tpu.dynamic_rotate %8 by %c255_i32 dim 1 : vector<8x256xf32>, i32 -> vector<8x256xf32>
    %c1_8 = arith.constant 1 : index
    %c0_9 = arith.constant 0 : index
    %15 = vector.load %arg2[%c1_8, %c0_9] : memref<5x256xf32, #tpu.memory_space<vmem>>, vector<1x256xf32>
    %16 = vector.broadcast %15 : vector<1x256xf32> to vector<8x256xf32>
    %17 = arith.mulf %14, %16 : vector<8x256xf32>
    %18 = arith.addf %13, %17 : vector<8x256xf32>
    %c16_i32 = arith.constant 16 : i32
    %19 = tpu.dynamic_rotate %18 by %c16_i32 dim 1 : vector<8x256xf32>, i32 -> vector<8x256xf32>
    %c2_10 = arith.constant 2 : index
    %c0_11 = arith.constant 0 : index
    %20 = vector.load %arg2[%c2_10, %c0_11] : memref<5x256xf32, #tpu.memory_space<vmem>>, vector<1x256xf32>
    %21 = vector.broadcast %20 : vector<1x256xf32> to vector<8x256xf32>
    %22 = arith.mulf %19, %21 : vector<8x256xf32>
    %23 = arith.addf %18, %22 : vector<8x256xf32>
    %c240_i32 = arith.constant 240 : i32
    %24 = tpu.dynamic_rotate %18 by %c240_i32 dim 1 : vector<8x256xf32>, i32 -> vector<8x256xf32>
    %c3 = arith.constant 3 : index
    %c0_12 = arith.constant 0 : index
    %25 = vector.load %arg2[%c3, %c0_12] : memref<5x256xf32, #tpu.memory_space<vmem>>, vector<1x256xf32>
    %26 = vector.broadcast %25 : vector<1x256xf32> to vector<8x256xf32>
    %27 = arith.mulf %24, %26 : vector<8x256xf32>
    %28 = arith.addf %23, %27 : vector<8x256xf32>
    %c4 = arith.constant 4 : index
    %c0_13 = arith.constant 0 : index
    %29 = vector.load %arg2[%c4, %c0_13] : memref<5x256xf32, #tpu.memory_space<vmem>>, vector<1x256xf32>
    %30 = vector.broadcast %29 : vector<1x256xf32> to vector<8x256xf32>
    %31 = arith.mulf %28, %30 : vector<8x256xf32>
    %32 = arith.subf %31, %8 : vector<8x256xf32>
    %33 = vector.broadcast %4 : vector<8x1xf32> to vector<8x256xf32>
    %34 = arith.mulf %33, %32 : vector<8x256xf32>
    %35 = arith.addf %1, %34 : vector<8x256xf32>
    %c0_14 = arith.constant 0 : index
    %c0_15 = arith.constant 0 : index
    %c0_16 = arith.constant 0 : index
    %36 = vector.load %arg4[%c0_14, %c0_15, %c0_16] : memref<1x8x256xf32, #tpu.memory_space<vmem>>, vector<1x8x256xf32>
    %37 = vector.shape_cast %36 : vector<1x8x256xf32> to vector<8x256xf32>
    %38 = vector.shape_cast %35 : vector<8x256xf32> to vector<1x8x256xf32>
    tpu.vector_store %arg4[%c0_14, %c0_15, %c0_16], %38 {strides = array<i32>} : memref<1x8x256xf32, #tpu.memory_space<vmem>>, vector<1x8x256xf32>,
    %cst = arith.constant dense<0.000000e+00> : vector<8xf32>
    %39 = vector.multi_reduction <add>, %35, %cst [1] : vector<8x256xf32> to vector<8xf32>
    %40 = vector.shape_cast %39 : vector<8xf32> to vector<8x1xf32>
    %c0_17 = arith.constant 0 : index
    %c0_18 = arith.constant 0 : index
    %c0_19 = arith.constant 0 : index
    %41 = vector.load %arg5[%c0_17, %c0_18, %c0_19] : memref<1x8x2xf32, #tpu.memory_space<vmem>>, vector<1x8x1xf32>
    %42 = vector.shape_cast %41 : vector<1x8x1xf32> to vector<8x1xf32>
    %43 = vector.shape_cast %40 : vector<8x1xf32> to vector<1x8x1xf32>
    tpu.vector_store %arg5[%c0_17, %c0_18, %c0_19], %43 {strides = array<i32>} : memref<1x8x2xf32, #tpu.memory_space<vmem>>, vector<1x8x1xf32>,
    %44 = arith.mulf %35, %35 : vector<8x256xf32>
    %cst_20 = arith.constant dense<0.000000e+00> : vector<8xf32>
    %45 = vector.multi_reduction <add>, %44, %cst_20 [1] : vector<8x256xf32> to vector<8xf32>
    %46 = vector.shape_cast %45 : vector<8xf32> to vector<8x1xf32>
    %c0_21 = arith.constant 0 : index
    %c0_22 = arith.constant 0 : index
    %c1_23 = arith.constant 1 : index
    %47 = vector.load %arg5[%c0_21, %c0_22, %c1_23] : memref<1x8x2xf32, #tpu.memory_space<vmem>>, vector<1x8x1xf32>
    %48 = vector.shape_cast %47 : vector<1x8x1xf32> to vector<8x1xf32>
    %49 = vector.shape_cast %46 : vector<8x1xf32> to vector<1x8x1xf32>
    tpu.vector_store %arg5[%c0_21, %c0_22, %c1_23], %49 {strides = array<i32>} : memref<1x8x2xf32, #tpu.memory_space<vmem>>, vector<1x8x1xf32>,
    return
  }
  func.func @transform_0(%arg0: i32) -> (i32, i32, i32) {
    %c0_i32 = arith.constant 0 : i32
    %c0_i32_0 = arith.constant 0 : i32
    %c0_i32_1 = arith.constant 0 : i32
    return %arg0, %c0_i32, %c0_i32_0 : i32, i32, i32
  }
  func.func @transform_1(%arg0: i32) -> (i32, i32) {
    %c0_i32 = arith.constant 0 : i32
    %c0_i32_0 = arith.constant 0 : i32
    %c0_i32_1 = arith.constant 0 : i32
    return %c0_i32, %c0_i32_0 : i32, i32
  }
  func.func @transform_2(%arg0: i32) -> (i32, i32) {
    %c0_i32 = arith.constant 0 : i32
    %c0_i32_0 = arith.constant 0 : i32
    %c0_i32_1 = arith.constant 0 : i32
    return %c0_i32, %c0_i32_0 : i32, i32
  }
  func.func @transform_3(%arg0: i32) -> (i32, i32, i32) {
    %c0_i32 = arith.constant 0 : i32
    %c0_i32_0 = arith.constant 0 : i32
    %c0_i32_1 = arith.constant 0 : i32
    return %arg0, %c0_i32, %c0_i32_0 : i32, i32, i32
  }
  func.func @transform_4(%arg0: i32) -> (i32, i32, i32) {
    %c0_i32 = arith.constant 0 : i32
    %c0_i32_0 = arith.constant 0 : i32
    %c0_i32_1 = arith.constant 0 : i32
    return %arg0, %c0_i32, %c0_i32_0 : i32, i32, i32
  }
}

module attributes {stable_mosaic.version = 11 : i64} {
  func.func @mlp_kernel(%arg0: i32, %arg1: i32, %arg2: memref<1x8x256xf32, #tpu.memory_space<vmem>>, %arg3: memref<8x4xf32, #tpu.memory_space<vmem>>, %arg4: memref<32x1xf32, #tpu.memory_space<vmem>>, %arg5: memref<32x8xf32, #tpu.memory_space<vmem>>, %arg6: memref<8x32xf32, #tpu.memory_space<vmem>>, %arg7: memref<1x8x256xf32, #tpu.memory_space<vmem>>) attributes {dimension_semantics = [#tpu.dimension_semantics<parallel>, #tpu.dimension_semantics<parallel>], iteration_bounds = array<i64: 2, 1>, scalar_prefetch = 0 : i64, scratch_operands = 0 : i64, tpu.core_type = #tpu.core_type<tc>, window_params = [{transform_indices = @transform_0, window_bounds = array<i64: 1, 8, 256>}, {pipeline_mode = #tpu.pipeline_mode<synchronous>, transform_indices = @transform_1, window_bounds = array<i64: 8, 4>}, {pipeline_mode = #tpu.pipeline_mode<synchronous>, transform_indices = @transform_2, window_bounds = array<i64: 32, 1>}, {pipeline_mode = #tpu.pipeline_mode<synchronous>, transform_indices = @transform_3, window_bounds = array<i64: 32, 8>}, {pipeline_mode = #tpu.pipeline_mode<synchronous>, transform_indices = @transform_4, window_bounds = array<i64: 8, 32>}, {transform_indices = @transform_5, window_bounds = array<i64: 1, 8, 256>}]} {
    %c0 = arith.constant 0 : index
    %c0_0 = arith.constant 0 : index
    %c0_1 = arith.constant 0 : index
    %0 = vector.load %arg2[%c0, %c0_0, %c0_1] : memref<1x8x256xf32, #tpu.memory_space<vmem>>, vector<1x8x256xf32>
    %1 = vector.shape_cast %0 : vector<1x8x256xf32> to vector<8x256xf32>
    %c0_2 = arith.constant 0 : index
    %c0_3 = arith.constant 0 : index
    %2 = vector.load %arg3[%c0_2, %c0_3] : memref<8x4xf32, #tpu.memory_space<vmem>>, vector<8x1xf32>
    %c0_4 = arith.constant 0 : index
    %c1 = arith.constant 1 : index
    %3 = vector.load %arg3[%c0_4, %c1] : memref<8x4xf32, #tpu.memory_space<vmem>>, vector<8x1xf32>
    %c0_5 = arith.constant 0 : index
    %c2 = arith.constant 2 : index
    %4 = vector.load %arg3[%c0_5, %c2] : memref<8x4xf32, #tpu.memory_space<vmem>>, vector<8x1xf32>
    %c0_6 = arith.constant 0 : index
    %c3 = arith.constant 3 : index
    %5 = vector.load %arg3[%c0_6, %c3] : memref<8x4xf32, #tpu.memory_space<vmem>>, vector<8x1xf32>
    %6 = vector.broadcast %2 : vector<8x1xf32> to vector<8x256xf32>
    %7 = arith.mulf %1, %6 : vector<8x256xf32>
    %8 = vector.broadcast %3 : vector<8x1xf32> to vector<8x256xf32>
    %9 = arith.addf %7, %8 : vector<8x256xf32>
    %c0_7 = arith.constant 0 : index
    %c0_8 = arith.constant 0 : index
    %10 = vector.load %arg5[%c0_7, %c0_8] : memref<32x8xf32, #tpu.memory_space<vmem>>, vector<32x8xf32>
    %cst = arith.constant dense<0.000000e+00> : vector<32x256xf32>
    %11 = tpu.matmul %10, %9, %cst {dimension_numbers = #tpu.dot_dimension_numbers<[1], [0], [0], [1], [0, 0, 1, 1], [], []>} : vector<32x8xf32>, vector<8x256xf32>, vector<32x256xf32> -> vector<32x256xf32>
    %c0_9 = arith.constant 0 : index
    %c0_10 = arith.constant 0 : index
    %12 = vector.load %arg4[%c0_9, %c0_10] : memref<32x1xf32, #tpu.memory_space<vmem>>, vector<32x1xf32>
    %13 = vector.broadcast %12 : vector<32x1xf32> to vector<32x256xf32>
    %14 = arith.addf %11, %13 : vector<32x256xf32>
    %cst_11 = arith.constant 0.000000e+00 : f32
    %15 = vector.broadcast %cst_11 : f32 to vector<32x256xf32>
    %16 = arith.maximumf %14, %15 : vector<32x256xf32>
    %c0_12 = arith.constant 0 : index
    %c0_13 = arith.constant 0 : index
    %17 = vector.load %arg6[%c0_12, %c0_13] : memref<8x32xf32, #tpu.memory_space<vmem>>, vector<8x32xf32>
    %cst_14 = arith.constant dense<0.000000e+00> : vector<8x256xf32>
    %18 = tpu.matmul %17, %16, %cst_14 {dimension_numbers = #tpu.dot_dimension_numbers<[1], [0], [0], [1], [0, 0, 1, 1], [], []>} : vector<8x32xf32>, vector<32x256xf32>, vector<8x256xf32> -> vector<8x256xf32>
    %19 = vector.broadcast %4 : vector<8x1xf32> to vector<8x256xf32>
    %20 = arith.addf %18, %19 : vector<8x256xf32>
    %21 = vector.broadcast %5 : vector<8x1xf32> to vector<8x256xf32>
    %22 = arith.mulf %21, %20 : vector<8x256xf32>
    %23 = arith.addf %1, %22 : vector<8x256xf32>
    %c0_15 = arith.constant 0 : index
    %c0_16 = arith.constant 0 : index
    %c0_17 = arith.constant 0 : index
    %24 = vector.load %arg7[%c0_15, %c0_16, %c0_17] : memref<1x8x256xf32, #tpu.memory_space<vmem>>, vector<1x8x256xf32>
    %25 = vector.shape_cast %24 : vector<1x8x256xf32> to vector<8x256xf32>
    %26 = vector.shape_cast %23 : vector<8x256xf32> to vector<1x8x256xf32>
    tpu.vector_store %arg7[%c0_15, %c0_16, %c0_17], %26 {strides = array<i32>} : memref<1x8x256xf32, #tpu.memory_space<vmem>>, vector<1x8x256xf32>,
    return
  }
  func.func @transform_0(%arg0: i32, %arg1: i32) -> (i32, i32, i32) {
    %c0_i32 = arith.constant 0 : i32
    %c0_i32_0 = arith.constant 0 : i32
    return %arg0, %c0_i32, %arg1 : i32, i32, i32
  }
  func.func @transform_1(%arg0: i32, %arg1: i32) -> (i32, i32) {
    %c0_i32 = arith.constant 0 : i32
    %c0_i32_0 = arith.constant 0 : i32
    %c0_i32_1 = arith.constant 0 : i32
    return %c0_i32, %c0_i32_0 : i32, i32
  }
  func.func @transform_2(%arg0: i32, %arg1: i32) -> (i32, i32) {
    %c0_i32 = arith.constant 0 : i32
    %c0_i32_0 = arith.constant 0 : i32
    %c0_i32_1 = arith.constant 0 : i32
    return %c0_i32, %c0_i32_0 : i32, i32
  }
  func.func @transform_3(%arg0: i32, %arg1: i32) -> (i32, i32) {
    %c0_i32 = arith.constant 0 : i32
    %c0_i32_0 = arith.constant 0 : i32
    %c0_i32_1 = arith.constant 0 : i32
    return %c0_i32, %c0_i32_0 : i32, i32
  }
  func.func @transform_4(%arg0: i32, %arg1: i32) -> (i32, i32) {
    %c0_i32 = arith.constant 0 : i32
    %c0_i32_0 = arith.constant 0 : i32
    %c0_i32_1 = arith.constant 0 : i32
    return %c0_i32, %c0_i32_0 : i32, i32
  }
  func.func @transform_5(%arg0: i32, %arg1: i32) -> (i32, i32, i32) {
    %c0_i32 = arith.constant 0 : i32
    %c0_i32_0 = arith.constant 0 : i32
    return %arg0, %c0_i32, %arg1 : i32, i32, i32
  }
}

</mosaic_0001>

<bundles_post_ra>
// kernel: tile.20
= control target key start
LH: loop header
LB: loop body
LE: loop exit
PB: predicated region body
PF: predicated region fallthrough
CT: control target
= control target key end

     0   :  { %s28_s0 = inlined_call_operand.vmem [shape: f32[16], index: 0, kind: input, shape index: {}]   ;;  %s29_s1 = inlined_call_operand.vmem [shape: f32[16,16], index: 1, kind: output, shape index: {}]  }
   0x1   :  { %v4_v0 = vld [vmem:[%s28_s0] ss:$0 sm:$0xff] }
   0x2   :  { %5 = vst [vmem:[%s29_s1] sm:$0xff] %v4_v0  ;;  %8 = vst [vmem:[%s29_s1 + $0x8] sm:$0xff] %v4_v0 }

// kernel: bottleneck_block.3
= control target key start
LH: loop header
LB: loop body
LE: loop exit
PB: predicated region body
PF: predicated region fallthrough
CT: control target
= control target key end

     0   :  { %s305_s6 = smov 0   ;;  %s307_s7 = smov 0   ;;  %s338_s0 = inlined_call_operand.vmem [shape: f32[2,8,256], index: 0, kind: input, shape index: {}]   ;;  %s339_s1 = inlined_call_operand.vmem [shape: f32[2,8,2], index: 1, kind: output, shape index: {}]  }
   0x1   :  { %s309_s8 = smov 0  }
   0x2 LB: > { %s23_s9 = sadd.s32 1, %s288_s7  ;;  %p238_p0 = scmp.ge.s32.totalorder %s292_s8, 1  ;;  %s292_s8 = sphi %s309_s8, %s11_s8   ;;  %s288_s7 = sphi %s307_s7, %s341_s7   ;;  %s284_s6 = sphi %s305_s6, %s340_s6  }
   0x3   : > { %p25_p1 = scmp.ge.s32.totalorder %s23_s9, 2  ;;  %p106_p2 = scmp.lt.s32.totalorder %s292_s8, 3 }
   0x5   : > { %s343_s9 = smov (%p25_p1, %s23_s9), 0  ;;  %p107_p3 = pnand %p238_p0, %p106_p2 }
   0x6   : > { %p130_p4 = scmp.lt.s32.totalorder (!%p107_p3), %s284_s6, 1 }
   0x7   : > { %110 = sbr.rel (%p107_p3) target bundleno = 169 (0xa9), region = 24 }
   0xc   : > { %s345_s6 = smov (!%p130_p4, %s284_s6), 1  ;;  %vm147_vm0 = vcmask 15360   ;;  %v294_v0 = vmov 0.0   ;;  %vm156_vm1 = vcmask 7168   ;;  %vm165_vm2 = vcmask 15368  }
   0xd   : > { %s244_s10 = sshll.u32 %s345_s6, 4  ;;  %s241_s11 = sshll.u32 %s345_s6, 3 }
   0xe   : > { %s137_s14 = scalar_lea.vmem %s338_s0, %s244_s10  ;;  %s142_s17 = scalar_lea.vmem %s339_s1, %s241_s11 }
   0xf   : > { %148 = vst.msk [vmem:[%s142_s17] sm:$0xff] %vm147_vm0, %v294_v0  ;;  %v149_v1 = vld [vmem:[%s137_s14] sm:$0xff]  ;;  %v150_v2 = vld [vmem:[%s137_s14 + $0x8] sm:$0xff] }
  0x10   : > { %v152_v3 = vadd.f32 %v150_v2, %v149_v1  ;;  %v159_v4 = vmul.f32 %v149_v1, %v149_v1  ;;  %v160_v5 = vmul.f32 %v150_v2, %v150_v2 }
  0x12   : > { %153 = vadd.xlane.f32.xlu0 %v152_v3  ;;  %v161_v6 = vadd.f32 %v160_v5, %v159_v4 }
  0x16   : > { %162 = vadd.xlane.f32.xlu0 %v161_v6  ;;  %v151_v7 = vld [vmem:[%s142_s17] sm:$0xff] }
  0x9b   : > { %v154_v8 = vpop.xlane.xlu0 %153 }
  0x9c   : > { %v155_v9 = vadd.f32 %v154_v8, %v151_v7 }
  0x9e   : > { %157 = vst.msk [vmem:[%s142_s17] sm:$0xff] %vm156_vm1, %v155_v9 }
  0x9f   : > { %v163_v10 = vpop.xlane.xlu0 %162 }
  0xa5   : > { %v158_v11 = vld [vmem:[%s142_s17] sm:$0xff] }
  0xa6   : > { %v164_v12 = vadd.f32 %v163_v10, %v158_v11 }
  0xa8   : > { %166 = vst.msk [vmem:[%s142_s17] sm:$0xff] %vm165_vm2, %v164_v12 }
  0xa9 PF: > { %s11_s8 = sadd.s32 1, %s292_s8   ;;  %s340_s6 = smov %s288_s7 }
  0xaa   : > { %p8_p5 = scmp.ge.s32.totalorder %s11_s8, 4   ;;  %s341_s7 = smov %s343_s9 }
  0xac   :  { %10 = sbr.rel (!%p8_p5) target bundleno = 2 (0x2), region = 58 }

// kernel: bottleneck_block.5
= control target key start
LH: loop header
LB: loop body
LE: loop exit
PB: predicated region body
PF: predicated region fallthrough
CT: control target
= control target key end

     0   :  { %s708_s18 = smov 0   ;;  %s710_s19 = smov 0   ;;  %s790_s0 = inlined_call_operand.vmem [shape: f32[2,8,256], index: 0, kind: input, shape index: {}]   ;;  %s791_s1 = inlined_call_operand.vmem [shape: f32[8,4], index: 1, kind: input, shape index: {}]   ;;  %s792_s2 = inlined_call_operand.vmem [shape: f32[32,1], index: 2, kind: input, shape index: {}]   ;;  %s793_s3 = inlined_call_operand.vmem [shape: f32[32,8], index: 3, kind: input, shape index: {}]   ;;  %s794_s4 = inlined_call_operand.vmem [shape: f32[8,32], index: 4, kind: input, shape index: {}]   ;;  %s795_s5 = inlined_call_operand.vmem [shape: f32[2,8,256], index: 5, kind: output, shape index: {}]  }
   0x1   :  { %s712_s20 = smov 0  }
   0x2 LB: > { %s27_s21 = sadd.s32 1, %s667_s19  ;;  %p599_p0 = scmp.ge.s32.totalorder %s671_s20, 1  ;;  %s671_s20 = sphi %s712_s20, %s15_s20   ;;  %s667_s19 = sphi %s710_s19, %s797_s19   ;;  %s663_s18 = sphi %s708_s18, %s796_s18  }
   0x3   : > { %p29_p1 = scmp.ge.s32.totalorder %s27_s21, 2  ;;  %p208_p2 = scmp.lt.s32.totalorder %s671_s20, 3 }
   0x5   : > { %s799_s21 = smov (%p29_p1, %s27_s21), 0  ;;  %p209_p3 = pnand %p599_p0, %p208_p2 }
   0x6   : > { %p245_p4 = scmp.lt.s32.totalorder (!%p209_p3), %s663_s18, 1 }
   0x7   : > { %212 = sbr.rel (%p209_p3) target bundleno = 568 (0x238), region = 40 }
   0xc   : > { %v266_v0 = vld [vmem:[%s791_s1] sm:$0xff]  ;;  %v673_v1 = vmov 0   ;;  %v674_v2 = vmov 1   ;;  %v675_v3 = vmov 0.0   ;;  %v287_v4 = vld [vmem:[%s792_s2 + $0x18] sm:$0xff]  ;;  %v286_v6 = vld [vmem:[%s792_s2 + $0x10] sm:$0xff] }
   0xd   : > { %642 = vset.pattern.permute.xlu0 %v673_v1  ;;  %644 = vset.pattern.permute.xlu1 %v673_v1  ;;  %v284_v5 = vld [vmem:[%s792_s2] sm:$0xff]  ;;  %v285_v7 = vld [vmem:[%s792_s2 + $0x8] sm:$0xff]  ;;  %s801_s18 = smov (!%p245_p4, %s663_s18), 1  ;;  %vm308_vm0 = vcmask 64512   ;;  %v282_v18 = vld [vmem:[%s793_s3 + $0x10] sm:$0xff]  ;;  %v676_v20 = vmov 2  }
   0xe   : > { %269 = vperm.xlu0 %642, %v266_v0   ;;  %385 = vmatprep.mubr.f32.mxu0 %v675_v3  ;;  %s611_s7 = sshll.u32 %s801_s18, 4  ;;  %v280_v16 = vld [vmem:[%s793_s3] sm:$0xff]  ;;  %v281_v17 = vld [vmem:[%s793_s3 + $0x8] sm:$0xff]  ;;  %v283_v19 = vld [vmem:[%s793_s3 + $0x18] sm:$0xff]  ;;  %v677_v21 = vmov 3   ;;  %vm423_vm1 = vcmask 261120  }
   0xf   : > { %491 = vmatprep.mubr.f32.mxu1 %v675_v3  ;;  %305 = vperm.xlu1 %644, %v287_v4   ;;  %s252_s10 = scalar_lea.vmem %s790_s0, %s611_s7  ;;  %v418_v50 = vld [vmem:[%s794_s4] sm:$0xff]  ;;  %s262_s27 = scalar_lea.vmem %s795_s5, %s611_s7 }
  0x10   : > { %v753_v9 = vld [vmem:[%s252_s10] sm:$0xff]  ;;  %v755_v10 = vld [vmem:[%s252_s10 + $0x8] sm:$0xff] }
  0x12   : > { %643 = vset.pattern.permute.xlu0 %v674_v2 }
  0x13   : > { %275 = vperm.xlu0 %643, %v266_v0   ;;  %300 = vperm.xlu1 %644, %v286_v6  }
  0x17   : > { %645 = vset.pattern.permute.xlu0 %v673_v1  ;;  %295 = vperm.xlu1 %644, %v285_v7  }
  0x18   : > { %290 = vperm.xlu0 %645, %v284_v5  }
  0x1b   : > { %646 = vset.pattern.permute.xlu1 %v676_v20 }
  0x1c   : > { %648 = vset.pattern.permute.xlu0 %v677_v21  ;;  %420 = vperm.xlu1 %646, %v266_v0  }
  0x20   : > { %647 = vset.pattern.permute.xlu1 %v677_v21 }
  0x21   : > { %499 = vperm.xlu1 %647, %v266_v0  }
  0x89   : > { %v270_v8 = vpop.permute.xlu0 %269 }
  0x8a   : > { %v272_v11 = vmul.f32 %v270_v8, %v753_v9  ;;  %v273_v12 = vmul.f32 %v270_v8, %v755_v10  ;;  %v306_v24 = vpop.permute.xlu1 %305 }
  0x8e   : > { %v276_v13 = vpop.permute.xlu0 %275  ;;  %v301_v28 = vpop.permute.xlu1 %300 }
  0x8f   : > { %v279_v14 = vadd.f32 %v276_v13, %v273_v12  ;;  %v278_v15 = vadd.f32 %v276_v13, %v272_v11 }
  0x91   : > { %351 = vmatprep.subr.mxu0 %v279_v14 }
  0x92   : > { %352 = vmatpush1.msra.mxu0 %v278_v15  ;;  %v296_v33 = vpop.permute.xlu1 %295 }
  0x93   : > { %604 = vmatmul.mubr.msk.f32.vlgmr.msra.gmra.mxu0 %vm308_vm0, %v280_v16  ;;  %v291_v37 = vpop.permute.xlu0 %290 }
  0x94   : > { %391 = vmatprep.mubr.f32.mxu0 %v675_v3 }
  0x97   : > { %605 = vmatmul.mubr.msk.f32.gmra.mxu0 %vm308_vm0, %v281_v17  ;;  %v421_v51 = vpop.permute.xlu1 %420 }
  0x98   : > { %397 = vmatprep.mubr.f32.mxu0 %v675_v3 }
  0x9b   : > { %606 = vmatmul.mubr.msk.f32.gmra.mxu0 %vm308_vm0, %v282_v18 }
  0x9c   : > { %403 = vmatprep.mubr.f32.mxu0 %v675_v3  ;;  %v500_v53 = vpop.permute.xlu1 %499 }
  0x9f   : > { %607 = vmatmul.mubr.msk.f32.gmra.mxu0 %vm308_vm0, %v283_v19 }
 0x153   : > { %v387_v22 = vpop.f32.mrf.mxu0 }
 0x154   : > { %v388_v44 = vadd.f32 %v387_v22, %v291_v37 }
 0x155   : > { %v389_v23 = vpop.f32.mrf.mxu0 }
 0x156   : > { %v390_v42 = vadd.f32 %v389_v23, %v291_v37  ;;  %v410_v49 = vmax.f32 %v388_v44, 0.0 }
 0x157   : > { %v393_v25 = vpop.f32.mrf.mxu0 }
 0x158   : > { %v394_v40 = vadd.f32 %v393_v25, %v296_v33  ;;  %v411_v48 = vmax.f32 %v390_v42, 0.0 }
 0x159   : > { %v395_v26 = vpop.f32.mrf.mxu0 }
 0x15a   : > { %v396_v38 = vadd.f32 %v395_v26, %v296_v33  ;;  %v412_v47 = vmax.f32 %v394_v40, 0.0 }
 0x15b   : > { %v399_v27 = vpop.f32.mrf.mxu0 }
 0x15c   : > { %v400_v36 = vadd.f32 %v399_v27, %v301_v28  ;;  %v413_v46 = vmax.f32 %v396_v38, 0.0 }
 0x15d   : > { %v401_v29 = vpop.f32.mrf.mxu0 }
 0x15e   : > { %v402_v34 = vadd.f32 %v401_v29, %v301_v28  ;;  %v414_v45 = vmax.f32 %v400_v36, 0.0 }
 0x15f   : > { %v405_v30 = vpop.f32.mrf.mxu0 }
 0x160   : > { %v406_v31 = vadd.f32 %v405_v30, %v306_v24  ;;  %v415_v43 = vmax.f32 %v402_v34, 0.0 }
 0x161   : > { %v407_v32 = vpop.f32.mrf.mxu0 }
 0x162   : > { %v408_v35 = vadd.f32 %v407_v32, %v306_v24  ;;  %v416_v41 = vmax.f32 %v406_v31, 0.0 }
 0x164   : > { %v417_v39 = vmax.f32 %v408_v35, 0.0 }
 0x166   : > { %451 = vmatprep.subr.mxu1 %v417_v39 }
 0x167   : > { %452 = vmatpush1.msra.mxu1 %v416_v41 }
 0x168   : > { %453 = vmatprep.subr.mxu1 %v415_v43 }
 0x169   : > { %454 = vmatpush1.msra.mxu1 %v414_v45 }
 0x16a   : > { %455 = vmatprep.subr.mxu1 %v413_v46 }
 0x16b   : > { %456 = vmatpush1.msra.mxu1 %v412_v47 }
 0x16c   : > { %457 = vmatprep.subr.mxu1 %v411_v48 }
 0x16d   : > { %458 = vmatpush1.msra.mxu1 %v410_v49 }
 0x16e   : > { %608 = vmatmul.mubr.msk.f32.vlgmr.msra.gmra.mxu1 %vm423_vm1, %v418_v50 }
 0x22e   : > { %v493_v52 = vpop.f32.mrf.mxu1 }
 0x22f   : > { %v494_v54 = vadd.f32 %v493_v52, %v421_v51 }
 0x230   : > { %v495_v55 = vpop.f32.mrf.mxu1 }
 0x231   : > { %v502_v56 = vmul.f32 %v500_v53, %v494_v54  ;;  %v496_v57 = vadd.f32 %v495_v55, %v421_v51 }
 0x233   : > { %v504_v58 = vadd.f32 %v502_v56, %v753_v9  ;;  %v503_v59 = vmul.f32 %v500_v53, %v496_v57 }
 0x235   : > { %506 = vst [vmem:[%s262_s27] sm:$0xff] %v504_v58  ;;  %v505_v60 = vadd.f32 %v503_v59, %v755_v10 }
 0x237   : > { %507 = vst [vmem:[%s262_s27 + $0x8] sm:$0xff] %v505_v60 }
 0x238 PF: > { %s15_s20 = sadd.s32 1, %s671_s20   ;;  %s796_s18 = smov %s667_s19 }
 0x239   : > { %p12_p5 = scmp.ge.s32.totalorder %s15_s20, 4   ;;  %s797_s19 = smov %s799_s21 }
 0x23b   :  { %14 = sbr.rel (!%p12_p5) target bundleno = 2 (0x2), region = 70 }

// kernel: bottleneck_block.4
= control target key start
LH: loop header
LB: loop body
LE: loop exit
PB: predicated region body
PF: predicated region fallthrough
CT: control target
= control target key end

     0   :  { %s524_s15 = smov 0   ;;  %s590_s0 = inlined_call_operand.vmem [shape: f32[2,8,256], index: 0, kind: input, shape index: {}]   ;;  %s591_s1 = inlined_call_operand.vmem [shape: f32[5,256], index: 1, kind: input, shape index: {}]   ;;  %s592_s2 = inlined_call_operand.vmem [shape: f32[8,4], index: 2, kind: input, shape index: {}]   ;;  %s593_s3 = inlined_call_operand.vmem [shape: f32[2,8,256], index: 3, kind: output, shape index: {0}]   ;;  %s594_s4 = inlined_call_operand.vmem [shape: f32[2,8,2], index: 4, kind: output, shape index: {1}]  }
   0x1 LB: > { %s447_s16 = sadd.s32 4294967295, %s490_s15   ;;  %p451_p0 = scmp.ge.s32.totalorder %s490_s15, 1  ;;  %s490_s15 = sphi %s524_s15, %s15_s15  }
   0x2   : > { %p165_p1 = scmp.lt.s32.totalorder %s490_s15, 3 }
   0x4   : > { %p166_p2 = pnand %p451_p0, %p165_p1 }
   0x5   : > { %p195_p3 = scmp.lt.s32.totalorder (!%p166_p2), %s447_s16, 1  ;;  %s494_s23 = smov (!%p166_p2), 127  }
   0x6   : > { %169 = sbr.rel (%p166_p2) target bundleno = 551 (0x227), region = 32  ;;  %s495_s24 = smov (!%p166_p2), 1  }
   0x7   : > { %s497_s29 = smov (!%p166_p2), 16   ;;  %s498_s30 = smov (!%p166_p2), 112  }
   0xb   : > { %v211_v0 = vld [vmem:[%s592_s2] sm:$0xff]  ;;  %v492_v1 = vmov 0   ;;  %v493_v2 = vmov 1   ;;  %s596_s16 = smov (!%p195_p3, %s447_s16), 1  ;;  %v496_v11 = vmov 2   ;;  %v229_v12 = vlaneseq }
   0xc   : > { %480 = vset.pattern.permute.xlu0 %v492_v1  ;;  %s463_s19 = sshll.u32 %s596_s16, 4  ;;  %482 = vset.pattern.permute.xlu1 %v496_v11  ;;  %v234_v17 = vld [vmem:[%s591_s1] ss:$8 sm:$0x3]  ;;  %s456_s14 = sshll.u32 %s596_s16, 3  ;;  %vm352_vm4 = vcmask 7168  }
   0xd   : > { %214 = vperm.xlu0 %480, %v211_v0   ;;  %s199_s22 = scalar_lea.vmem %s590_s0, %s463_s19  ;;  %v237_v13 = vshrl.u32 %v229_v12, 7  ;;  %v230_v14 = vand.u32 127, %v229_v12  ;;  %v457_v21 = vld [vmem:[%s591_s1 + $0x1] ss:$8 sm:$0x3]  ;;  %s204_s13 = scalar_lea.vmem %s593_s3, %s463_s19  ;;  %vm359_vm5 = vcmask 15368  }
   0xe   : > { %v543_v4 = vld [vmem:[%s199_s22] sm:$0xff]  ;;  %v545_v5 = vld [vmem:[%s199_s22 + $0x8] sm:$0xff]  ;;  %s208_s20 = scalar_lea.vmem %s594_s4, %s456_s14 }
   0xf   : > { %v238_v15 = vsub.s32 0, %v237_v13  ;;  %v242_v16 = vsub.s32 1, %v237_v13  ;;  %vm231_vm0 = vcmp.lt.s32.totalorder %v230_v14, 1  ;;  %vm254_vm1 = vcmp.lt.s32.totalorder %v230_v14, 127 }
  0x10   : > { %v458_v39 = vld [vmem:[%s591_s1 + $0x2] ss:$8 sm:$0x3]  ;;  %vm278_vm2 = vcmp.lt.s32.totalorder %v230_v14, 16  ;;  %vm302_vm3 = vcmp.lt.s32.totalorder %v230_v14, 112 }
  0x11   : > { %481 = vset.pattern.permute.xlu0 %v493_v2  ;;  %v239_v19 = vrot.slane %v234_v17, %v238_v15  ;;  %v243_v20 = vrot.slane %v234_v17, %v242_v16  ;;  %v263_v27 = vrot.slane %v457_v21, %v238_v15  ;;  %v267_v28 = vrot.slane %v457_v21, %v242_v16  ;;  %v459_v42 = vld [vmem:[%s591_s1 + $0x3] ss:$8 sm:$0x3]  ;;  %v460_v55 = vld [vmem:[%s591_s1 + $0x4] ss:$8 sm:$0x3] }
  0x12   : > { %220 = vperm.xlu0 %481, %v211_v0   ;;  %v287_v40 = vrot.slane %v458_v39, %v238_v15  ;;  %v291_v41 = vrot.slane %v458_v39, %v242_v16  ;;  %v311_v49 = vrot.slane %v459_v42, %v238_v15  ;;  %v315_v50 = vrot.slane %v459_v42, %v242_v16 }
  0x13   : > { %v328_v62 = vrot.slane %v460_v55, %v238_v15  ;;  %v332_v63 = vrot.slane %v460_v55, %v242_v16 }
  0x16   : > { %483 = vset.pattern.permute.xlu0 %v496_v11 }
  0x88   : > { %v215_v3 = vpop.permute.xlu0 %214 }
  0x89   : > { %v217_v6 = vmul.f32 %v215_v3, %v543_v4  ;;  %v218_v7 = vmul.f32 %v215_v3, %v545_v5 }
  0x8d   : > { %v221_v8 = vpop.permute.xlu0 %220 }
  0x8e   : > { %v549_v9 = vadd.f32 %v221_v8, %v217_v6  ;;  %v551_v10 = vadd.f32 %v221_v8, %v218_v7 }
  0x90   : > { %252 = vrot.lane.b32.xlu0 %v551_v10, %s494_s23  ;;  %225 = vrot.lane.b32.xlu1 %v549_v9, %s495_s24 }
  0x94   : > { %227 = vrot.lane.b32.xlu1 %v551_v10, %s495_s24 }
  0x98   : > { %250 = vrot.lane.b32.xlu1 %v549_v9, %s494_s23 }
 0x102   : > { %v226_v18 = vpop.permute.xlu1 %225  ;;  %v253_v29 = vpop.permute.xlu0 %252 }
 0x106   : > { %v228_v22 = vpop.permute.xlu1 %227 }
 0x107   : > { %v232_v23 = vsel %vm231_vm0, %v226_v18, %v228_v22  ;;  %v233_v24 = vsel %vm231_vm0, %v228_v22, %v226_v18 }
 0x108   : > { %v246_v25 = vmul.f32 %v239_v19, %v233_v24  ;;  %v247_v26 = vmul.f32 %v243_v20, %v232_v23 }
 0x10a   : > { %v251_v30 = vpop.permute.xlu1 %250  ;;  %v248_v33 = vadd.f32 %v246_v25, %v549_v9  ;;  %v249_v34 = vadd.f32 %v247_v26, %v551_v10 }
 0x10b   : > { %v255_v31 = vsel %vm254_vm1, %v251_v30, %v253_v29  ;;  %v256_v32 = vsel %vm254_vm1, %v253_v29, %v251_v30 }
 0x10c   : > { %v270_v35 = vmul.f32 %v263_v27, %v255_v31  ;;  %v271_v36 = vmul.f32 %v267_v28, %v256_v32 }
 0x10e   : > { %v273_v37 = vadd.f32 %v271_v36, %v249_v34  ;;  %v272_v38 = vadd.f32 %v270_v35, %v248_v33 }
 0x110   : > { %276 = vrot.lane.b32.xlu0 %v273_v37, %s497_s29  ;;  %274 = vrot.lane.b32.xlu1 %v272_v38, %s497_s29 }
 0x114   : > { %300 = vrot.lane.b32.xlu0 %v273_v37, %s498_s30  ;;  %298 = vrot.lane.b32.xlu1 %v272_v38, %s498_s30 }
 0x118   : > { %340 = vperm.xlu1 %482, %v211_v0  }
 0x182   : > { %v277_v43 = vpop.permute.xlu0 %276  ;;  %v275_v44 = vpop.permute.xlu1 %274 }
 0x183   : > { %v279_v45 = vsel %vm278_vm2, %v275_v44, %v277_v43  ;;  %v280_v46 = vsel %vm278_vm2, %v277_v43, %v275_v44 }
 0x184   : > { %v294_v47 = vmul.f32 %v287_v40, %v280_v46  ;;  %v295_v48 = vmul.f32 %v291_v41, %v279_v45 }
 0x186   : > { %v301_v51 = vpop.permute.xlu0 %300  ;;  %v299_v52 = vpop.permute.xlu1 %298  ;;  %v296_v56 = vadd.f32 %v294_v47, %v272_v38  ;;  %v297_v57 = vadd.f32 %v295_v48, %v273_v37 }
 0x187   : > { %v303_v53 = vsel %vm302_vm3, %v299_v52, %v301_v51  ;;  %v304_v54 = vsel %vm302_vm3, %v301_v51, %v299_v52 }
 0x188   : > { %v318_v58 = vmul.f32 %v311_v49, %v303_v53  ;;  %v319_v59 = vmul.f32 %v315_v50, %v304_v54 }
 0x18a   : > { %v320_v60 = vadd.f32 %v318_v58, %v296_v56  ;;  %v321_v61 = vadd.f32 %v319_v59, %v297_v57 }
 0x18c   : > { %v335_v0 = vmul.f32 %v328_v62, %v320_v60  ;;  %v336_v1 = vmul.f32 %v332_v63, %v321_v61 }
 0x18e   : > { %v337_v2 = vsub.f32 %v335_v0, %v549_v9  ;;  %v338_v3 = vsub.f32 %v336_v1, %v551_v10 }
 0x193   : > { %v341_v6 = vpop.permute.xlu1 %340 }
 0x194   : > { %v343_v7 = vmul.f32 %v341_v6, %v337_v2  ;;  %v344_v8 = vmul.f32 %v341_v6, %v338_v3 }
 0x196   : > { %v345_v11 = vadd.f32 %v343_v7, %v543_v4  ;;  %v346_v12 = vadd.f32 %v344_v8, %v545_v5 }
 0x198   : > { %347 = vst [vmem:[%s204_s13] sm:$0xff] %v345_v11  ;;  %348 = vst [vmem:[%s204_s13 + $0x8] sm:$0xff] %v346_v12  ;;  %v349_v13 = vadd.f32 %v346_v12, %v345_v11  ;;  %v354_v14 = vmul.f32 %v345_v11, %v345_v11  ;;  %v355_v9 = vmul.f32 %v346_v12, %v346_v12 }
 0x19a   : > { %350 = vadd.xlane.f32.xlu0 %v349_v13  ;;  %v356_v15 = vadd.f32 %v355_v9, %v354_v14 }
 0x19c   : > { %357 = vadd.xlane.f32.xlu1 %v356_v15 }
 0x223   : > { %v351_v10 = vpop.xlane.xlu0 %350 }
 0x224   : > { %353 = vst.msk [vmem:[%s208_s20] sm:$0xff] %vm352_vm4, %v351_v10 }
 0x225   : > { %v358_v4 = vpop.xlane.xlu1 %357 }
 0x226   : > { %360 = vst.msk [vmem:[%s208_s20] sm:$0xff] %vm359_vm5, %v358_v4 }
 0x227 PF: > { %s15_s15 = sadd.s32 1, %s490_s15  }
 0x228   : > { %p12_p4 = scmp.ge.s32.totalorder %s15_s15, 4  }
 0x22a   :  { %14 = sbr.rel (!%p12_p4) target bundleno = 1 (0x1), region = 78 }

</bundles_post_ra>
